<compile_context>
chip_gen: v7x
topology: tpu7x:2x2x1
jax: 0.10.0
libtpu: 0.0.40
codegen_flags: <defaults>
</compile_context>

<pallas_src>
import functools

import numpy as np
import jax
import jax.numpy as jnp
from jax import lax
from jax.experimental import pallas as pl
from jax.experimental.pallas import tpu as pltpu


def _attention_kernel(wh1_ref, wh2_ref, adj_ref, bias_ref, out_ref, *, alpha):
    # Per-grid-step shapes:
    #   wh1_ref  : (1, TR, 1)      f32   row-tile of Wh @ a[:F_out]
    #   wh2_ref  : (1, 1, N_pad)   f32   (Wh @ a[F_out:])^T, resident per batch
    #   adj_ref  : (1, TR, N_pad)  bf16 (or f32)
    #   bias_ref : (1, N_pad)      f32   0 for valid columns, -1e30 for padding
    #   out_ref  : (1, TR, N_pad)
    wh1 = wh1_ref[0]                                        # (TR, 1)
    wh2 = wh2_ref[0]                                        # (1, N_pad)

    e = wh1 + wh2                                           # (TR, N_pad)
    e = jnp.maximum(e, alpha * e)                           # LeakyReLU (alpha < 1)
    # Masked (adj==0) entries intentionally keep exp(0) softmax mass, matching
    # the PyTorch softmax(e * adj).  Padded columns get -1e30 via the bias row.
    s = e * adj_ref[0].astype(jnp.float32) + bias_ref[...]

    # Row-wise softmax (exact: each tile holds complete rows along the last axis).
    m = jnp.max(s, axis=-1, keepdims=True)
    p = jnp.exp(s - m)
    inv = pl.reciprocal(jnp.sum(p, axis=-1, keepdims=True), approx=True)
    att = p * inv

    # F.elu(attention) is the identity on softmax outputs -> skipped.
    # TODO(synk): F.dropout on the attention matrix is skipped (eval-mode kernel);
    # add pltpu.prng_* based masking if training-mode dropout is ever needed.
    out_ref[0] = att.astype(out_ref.dtype)


def _round_up(x, m):
    return (x + m - 1) // m * m


def _pick_row_tile(n_pad, batch, adj_bytes, out_bytes, vmem_cap):
    # Per row of a tile: double-buffered adj + out streams plus ~5 live f32
    # (TR, N_pad) temporaries (adj upcast, e, s, p, att) and the small padded
    # wh1 tile (TR x 128 lanes, double-buffered).
    per_row = n_pad * (2 * adj_bytes + 2 * out_bytes + 5 * 4) + 2 * 128 * 4
    budget = int(vmem_cap * 0.55)
    tr = budget // per_row
    # Keep at least ~4 grid steps total: megacore sharding on v7x + pipelining.
    min_steps = -(-4 // max(1, batch))          # ceil(4 / B)
    tr = min(int(tr), max(8, n_pad // min_steps), n_pad)
    tr = max(8, (tr // 8) * 8)
    while n_pad % tr:
        tr -= 8
    return tr


def attention_layer_forward(h, adj, W, a, *, alpha,
                            out_dtype=jnp.float32,
                            adj_dma_dtype=jnp.bfloat16,
                            row_tile=None):
    """AttentionLayer.forward.

    h: (B, N, F_in), adj: (B, N, N), W: (F_in, F_out), a: (2*F_out, 1).
    Returns ELU(softmax(LeakyReLU(Wh a1 + (Wh a2)^T) * adj)) of shape (B, N, N).
    """
    B, N, F_in = h.shape
    F_out = W.shape[1]
    assert adj.shape == (B, N, N)
    assert a.shape == (2 * F_out, 1)

    # Hoist the two rank-1 projections out of the kernel entirely:
    #   Wh @ a1 == h @ (W @ a1)   and   Wh @ a2 == h @ (W @ a2)
    Wf = W.astype(jnp.float32)
    wa = jnp.concatenate([jnp.dot(Wf, a[:F_out].astype(jnp.float32)),
                          jnp.dot(Wf, a[F_out:].astype(jnp.float32))], axis=1)  # (F_in, 2)
    wh = jnp.einsum("bnf,fk->bnk", h.astype(jnp.float32), wa)                   # (B, N, 2)

    # Pad the node axis to a lane-dense multiple of 128.  Padded columns are
    # masked via the bias row; padded rows are sliced off below.
    n_pad = _round_up(max(N, 1), 128)
    pad_n = n_pad - N
    wh1 = wh[..., 0:1]                                       # (B, N, 1)
    wh2t = jnp.swapaxes(wh[..., 1:2], 1, 2)                  # (B, 1, N)
    adjp = adj
    if pad_n:
        # TODO(synk): for unaligned N the pad/slice add extra HBM passes; keep the
        # padded (B, n_pad, n_pad) layout end-to-end if downstream allows it.
        wh1 = jnp.pad(wh1, ((0, 0), (0, pad_n), (0, 0)))
        wh2t = jnp.pad(wh2t, ((0, 0), (0, 0), (0, pad_n)))
        adjp = jnp.pad(adjp, ((0, 0), (0, pad_n), (0, pad_n)))
    # bf16 DMA is exact for 0/1 adjacency masks; pass adj_dma_dtype=jnp.float32
    # if adj carries arbitrary edge weights that need full precision.
    adjp = adjp.astype(adj_dma_dtype)

    # Precomputed padded-column bias row: 0 for valid columns, -1e30 for padding.
    col = jnp.arange(n_pad, dtype=jnp.int32)
    bias = jnp.where(col < N, jnp.float32(0.0), jnp.float32(-1e30)).reshape(1, n_pad)

    vmem_cap = 64 << 20
    try:  # size tiles for the actual generation (v7x: 64 MiB, v5e/v6e: 128 MiB)
        vmem_cap = int(getattr(pltpu.get_tpu_info(), "vmem_capacity_bytes", vmem_cap))
    except Exception:
        pass
    if not vmem_cap or vmem_cap < (16 << 20):
        vmem_cap = 64 << 20

    adj_bytes = np.dtype(adj_dma_dtype).itemsize
    out_bytes = np.dtype(out_dtype).itemsize
    if row_tile is None:
        tr = _pick_row_tile(n_pad, B, adj_bytes, out_bytes, vmem_cap)
    else:
        tr = min(max(8, (int(row_tile) // 8) * 8), n_pad)
        while n_pad % tr:
            tr -= 8
    vmem_limit = int(vmem_cap * 3 // 4)

    kernel = functools.partial(_attention_kernel, alpha=float(alpha))
    out_pad = pl.pallas_call(
        kernel,
        out_shape=jax.ShapeDtypeStruct((B, n_pad, n_pad), out_dtype),
        grid_spec=pltpu.PrefetchScalarGridSpec(
            num_scalar_prefetch=0,
            grid=(B, n_pad // tr),
            in_specs=[
                pl.BlockSpec((1, tr, 1), lambda b, r: (b, r, 0)),        # Wh @ a1 (row tile)
                pl.BlockSpec((1, 1, n_pad), lambda b, r: (b, 0, 0)),     # (Wh @ a2)^T (per batch)
                pl.BlockSpec((1, tr, n_pad), lambda b, r: (b, r, 0)),    # adj row tile
                pl.BlockSpec((1, n_pad), lambda b, r: (0, 0)),           # padded-column bias
            ],
            out_specs=pl.BlockSpec((1, tr, n_pad), lambda b, r: (b, r, 0)),
        ),
        compiler_params=pltpu.CompilerParams(
            dimension_semantics=("parallel", "parallel"),
            vmem_limit_bytes=vmem_limit),
    )(wh1, wh2t, adjp, bias)

    if pad_n:
        out_pad = out_pad[:, :N, :N]
    return out_pad


def _reference(h, adj, W, a, alpha):
    """Pure-JAX reference mirroring the PyTorch forward."""
    F_out = W.shape[1]
    Wh = jnp.einsum("bnf,fo->bno", h, W)
    wh1 = jnp.einsum("bno,ok->bnk", Wh, a[:F_out])
    wh2 = jnp.einsum("bno,ok->bnk", Wh, a[F_out:])
    e = wh1 + jnp.swapaxes(wh2, 1, 2)
    e = jnp.where(e > 0, e, alpha * e)
    att = jax.nn.softmax(e * adj, axis=-1)
    return jax.nn.elu(att)


if __name__ == "__main__":
    alpha = 0.2  # LeakyReLU negative slope
    key = jax.random.PRNGKey(0)

    def make_inputs(k, B, N, fin, fout):
        kW, ka, kh, kadj = jax.random.split(k, 4)
        gain = 1.414  # xavier_uniform_(gain=1.414) equivalents
        bw = gain * (6.0 / (fin + fout)) ** 0.5
        W = jax.random.uniform(kW, (fin, fout), jnp.float32, -bw, bw)
        ba = gain * (6.0 / (2 * fout + 1)) ** 0.5
        a = jax.random.uniform(ka, (2 * fout, 1), jnp.float32, -ba, ba)
        # (self.mlp = nn.Linear(out_features, 2) is never used in forward — omitted.)
        h = jax.random.normal(kh, (B, N, fin), jnp.float32)
        adj = (jax.random.uniform(kadj, (B, N, N)) > 0.5).astype(jnp.float32)
        return h, adj, W, a

    k1, k2 = jax.random.split(key)

    # Lane-dense case (N multiple of 128).
    h, adj, W, a = make_inputs(k1, 2, 128, 16, 8)
    out = jax.block_until_ready(attention_layer_forward(h, adj, W, a, alpha=alpha))
    assert out.shape == (2, 128, 128) and out.dtype == jnp.float32
    ref = _reference(h, adj, W, a, alpha)
    assert jnp.allclose(out, ref, rtol=1e-2, atol=1e-2), float(jnp.max(jnp.abs(out - ref)))

    # Tiny non-aligned case exercising the padding / column-bias path.
    h2, adj2, W2, a2 = make_inputs(k2, 2, 16, 8, 8)
    out2 = jax.block_until_ready(attention_layer_forward(h2, adj2, W2, a2, alpha=alpha))
    assert out2.shape == (2, 16, 16) and out2.dtype == jnp.float32
    ref2 = _reference(h2, adj2, W2, a2, alpha)
    assert jnp.allclose(out2, ref2, rtol=1e-2, atol=1e-2), float(jnp.max(jnp.abs(out2 - ref2)))

    print("KERNEL_OK")
</pallas_src>

<mosaic_0001>
module attributes {stable_mosaic.version = 11 : i64} {
  func.func @_attention_kernel(%arg0: i32, %arg1: i32, %arg2: memref<1x64x1xf32, #tpu.memory_space<vmem>>, %arg3: memref<1x1x128xf32, #tpu.memory_space<vmem>>, %arg4: memref<1x64x128xbf16, #tpu.memory_space<vmem>>, %arg5: memref<1x128xf32, #tpu.memory_space<vmem>>, %arg6: memref<1x64x128xf32, #tpu.memory_space<vmem>>) attributes {dimension_semantics = [#tpu.dimension_semantics<parallel>, #tpu.dimension_semantics<parallel>], iteration_bounds = array<i64: 2, 2>, scalar_prefetch = 0 : i64, scratch_operands = 0 : i64, tpu.core_type = #tpu.core_type<tc>, window_params = [{transform_indices = @transform_0, window_bounds = array<i64: 1, 64, 1>}, {transform_indices = @transform_1, window_bounds = array<i64: 1, 1, 128>}, {transform_indices = @transform_2, window_bounds = array<i64: 1, 64, 128>}, {pipeline_mode = #tpu.pipeline_mode<synchronous>, transform_indices = @transform_3, window_bounds = array<i64: 1, 128>}, {transform_indices = @transform_4, window_bounds = array<i64: 1, 64, 128>}]} {
    %c0 = arith.constant 0 : index
    %c0_0 = arith.constant 0 : index
    %c0_1 = arith.constant 0 : index
    %0 = vector.load %arg2[%c0, %c0_0, %c0_1] : memref<1x64x1xf32, #tpu.memory_space<vmem>>, vector<1x64x1xf32>
    %1 = vector.shape_cast %0 : vector<1x64x1xf32> to vector<64x1xf32>
    %c0_2 = arith.constant 0 : index
    %c0_3 = arith.constant 0 : index
    %c0_4 = arith.constant 0 : index
    %2 = vector.load %arg3[%c0_2, %c0_3, %c0_4] : memref<1x1x128xf32, #tpu.memory_space<vmem>>, vector<1x1x128xf32>
    %3 = vector.shape_cast %2 : vector<1x1x128xf32> to vector<1x128xf32>
    %4 = vector.broadcast %1 : vector<64x1xf32> to vector<64x128xf32>
    %5 = vector.broadcast %3 : vector<1x128xf32> to vector<64x128xf32>
    %6 = arith.addf %4, %5 : vector<64x128xf32>
    %cst = arith.constant 2.000000e-01 : f32
    %7 = vector.broadcast %cst : f32 to vector<64x128xf32>
    %8 = arith.mulf %7, %6 : vector<64x128xf32>
    %9 = arith.maximumf %6, %8 : vector<64x128xf32>
    %c0_5 = arith.constant 0 : index
    %c0_6 = arith.constant 0 : index
    %c0_7 = arith.constant 0 : index
    %10 = vector.load %arg4[%c0_5, %c0_6, %c0_7] : memref<1x64x128xbf16, #tpu.memory_space<vmem>>, vector<1x64x128xbf16>
    %11 = vector.shape_cast %10 : vector<1x64x128xbf16> to vector<64x128xbf16>
    %12 = arith.extf %11 : vector<64x128xbf16> to vector<64x128xf32>
    %13 = arith.mulf %9, %12 : vector<64x128xf32>
    %c0_8 = arith.constant 0 : index
    %c0_9 = arith.constant 0 : index
    %14 = vector.load %arg5[%c0_8, %c0_9] : memref<1x128xf32, #tpu.memory_space<vmem>>, vector<1x128xf32>
    %15 = vector.broadcast %14 : vector<1x128xf32> to vector<64x128xf32>
    %16 = arith.addf %13, %15 : vector<64x128xf32>
    %cst_10 = arith.constant dense<0xFF800000> : vector<64xf32>
    %17 = vector.multi_reduction <maximumf>, %16, %cst_10 [1] : vector<64x128xf32> to vector<64xf32>
    %18 = vector.shape_cast %17 : vector<64xf32> to vector<64x1xf32>
    %19 = vector.broadcast %18 : vector<64x1xf32> to vector<64x128xf32>
    %20 = arith.subf %16, %19 : vector<64x128xf32>
    %21 = math.exp %20 : vector<64x128xf32>
    %cst_11 = arith.constant dense<0.000000e+00> : vector<64xf32>
    %22 = vector.multi_reduction <add>, %21, %cst_11 [1] : vector<64x128xf32> to vector<64xf32>
    %23 = vector.shape_cast %22 : vector<64xf32> to vector<64x1xf32>
    %24 = tpu.reciprocal %23 {approx = true} : vector<64x1xf32> -> vector<64x1xf32>
    %25 = vector.broadcast %24 : vector<64x1xf32> to vector<64x128xf32>
    %26 = arith.mulf %21, %25 : vector<64x128xf32>
    %c0_12 = arith.constant 0 : index
    %c0_13 = arith.constant 0 : index
    %c0_14 = arith.constant 0 : index
    %27 = vector.load %arg6[%c0_12, %c0_13, %c0_14] : memref<1x64x128xf32, #tpu.memory_space<vmem>>, vector<1x64x128xf32>
    %28 = vector.shape_cast %27 : vector<1x64x128xf32> to vector<64x128xf32>
    %29 = vector.shape_cast %26 : vector<64x128xf32> to vector<1x64x128xf32>
    tpu.vector_store %arg6[%c0_12, %c0_13, %c0_14], %29 {strides = array<i32>} : memref<1x64x128xf32, #tpu.memory_space<vmem>>, vector<1x64x128xf32>,
    return
  }
  func.func @transform_0(%arg0: i32, %arg1: i32) -> (i32, i32, i32) {
    %c0_i32 = arith.constant 0 : i32
    %c0_i32_0 = arith.constant 0 : i32
    return %arg0, %arg1, %c0_i32 : i32, i32, i32
  }
  func.func @transform_1(%arg0: i32, %arg1: i32) -> (i32, i32, i32) {
    %c0_i32 = arith.constant 0 : i32
    %c0_i32_0 = arith.constant 0 : i32
    %c0_i32_1 = arith.constant 0 : i32
    return %arg0, %c0_i32, %c0_i32_0 : i32, i32, i32
  }
  func.func @transform_2(%arg0: i32, %arg1: i32) -> (i32, i32, i32) {
    %c0_i32 = arith.constant 0 : i32
    %c0_i32_0 = arith.constant 0 : i32
    return %arg0, %arg1, %c0_i32 : i32, i32, i32
  }
  func.func @transform_3(%arg0: i32, %arg1: i32) -> (i32, i32) {
    %c0_i32 = arith.constant 0 : i32
    %c0_i32_0 = arith.constant 0 : i32
    %c0_i32_1 = arith.constant 0 : i32
    return %c0_i32, %c0_i32_0 : i32, i32
  }
  func.func @transform_4(%arg0: i32, %arg1: i32) -> (i32, i32, i32) {
    %c0_i32 = arith.constant 0 : i32
    %c0_i32_0 = arith.constant 0 : i32
    return %arg0, %arg1, %c0_i32 : i32, i32, i32
  }
}

</mosaic_0001>

<bundles_post_ra>
// kernel: tpu_custom_call.1
= control target key start
LH: loop header
LB: loop body
LE: loop exit
PB: predicated region body
PF: predicated region fallthrough
CT: control target
= control target key end

     0   :  { %9 = vsyncpa [#allocation3], 0  ;;  %s1045_s0 = inlined_call_operand.vmem [shape: f32[2,128,1], index: 0, kind: input, shape index: {}]   ;;  %s1046_s1 = inlined_call_operand.vmem [shape: f32[2,1,128], index: 1, kind: input, shape index: {}]   ;;  %s1047_s2 = inlined_call_operand.vmem [shape: bf16[2,128,128], index: 2, kind: input, shape index: {}]   ;;  %s1048_s3 = inlined_call_operand.vmem [shape: f32[1,128], index: 3, kind: input, shape index: {}]   ;;  %s1049_s4 = inlined_call_operand.hbm [shape: f32[2,128,128], index: 4, kind: output, shape index: {}]  }
   0x1   :  { %11 = vsyncpa [#allocation3 + $0x1], 0  ;;  %s872_s15 = smov 0   ;;  %s874_s16 = smov 0  }
   0x2   :  { %s876_s17 = smov 0   ;;  %s878_s18 = smov 0  }
   0x3   :  { %s880_s19 = smov 0   ;;  %s882_s20 = smov 0  }
   0x4   :  { %s884_s21 = smov 0   ;;  %s886_s22 = smov 0  }
   0x5 LB: > { %s600_s23 = sadd.s32 4294967295, %s841_s22   ;;  %s601_s24 = sadd.s32 4294967294, %s841_s22   ;;  %s841_s22 = sphi %s886_s22, %s17_s22   ;;  %s837_s21 = sphi %s884_s21, %s1058_s21   ;;  %s833_s20 = sphi %s882_s20, %s1057_s20   ;;  %s829_s19 = sphi %s880_s19, %s1056_s19   ;;  %s825_s18 = sphi %s878_s18, %s1055_s18   ;;  %s821_s17 = sphi %s876_s17, %s1054_s17   ;;  %s817_s16 = sphi %s874_s16, %s1053_s16   ;;  %s813_s15 = sphi %s872_s15, %s1052_s15  }
   0x6   : > { %s26_s25 = sadd.s32 1, %s833_s20  ;;  %s29_s26 = sadd.s32 1, %s837_s21 }
   0x7   : > { %p27_p0 = scmp.ge.s32.totalorder %s26_s25, 2  ;;  %p151_p1 = scmp.ne.s32.totalorder %s821_s17, %s817_s16 }
   0x8   : > { %p152_p2 = scmp.eq.s32.totalorder %s600_s23, 3  ;;  %p157_p5 = scmp.ne.s32.totalorder %s817_s16, %s813_s15 }
   0x9   : > { %s1060_s25 = smov (%p27_p0, %s26_s25), 0  ;;  %s1062_s26 = smov (!%p27_p0, %s29_s26), %s837_s21 }
   0xa   : > { %s137_s27 = ssub.s32 %s833_s20, %s1060_s25  ;;  %p923_p3 = por %p152_p2, %p151_p1 }
   0xb   : > { %p31_p4 = scmp.ge.s32.totalorder %s1062_s26, 2  ;;  %p158_p6 = scmp.eq.s32.totalorder %s601_s24, 3 }
   0xc   : > { %p604_p7 = scmp.ge.s32.totalorder %s841_s22, 1  ;;  %p211_p9 = scmp.lt.s32.totalorder %s841_s22, 5 }
   0xd   : > { %s1064_s26 = smov (%p31_p4, %s1062_s26), 0  ;;  %p932_p8 = por %p158_p6, %p157_p5 }
   0xe   : > { %s136_s30 = ssub.s32 %s837_s21, %s1064_s26  ;;  %s141_s5 = sadd.s32 1, %s821_s17 }
   0xf   : > { %s138_s6 = sor.u32 %s137_s27, %s136_s30  ;;  %p212_p10 = pnand %p604_p7, %p211_p9 }
  0x10   : > { %p139_p11 = scmp.eq.s32.totalorder %s138_s6, 0  ;;  %s944_s8 = sshll.u32 (!%p212_p10), %s825_s18, 3  ;;  %v843_v0 = vmov (!%p212_p10), 0   ;;  %v613_v26 = vld [vmem:[%s1048_s3] ss:$0 sm:$0xff] (!%p212_p10) }
  0x11   : > { %215 = sbr.rel (%p212_p10) target bundleno = 514 (0x202), region = 36  ;;  %p254_p12 = scmp.lt.s32.totalorder (!%p212_p10), %s829_s19, 1  ;;  %714 = vset.pattern.permute.xlu1 (!%p212_p10), %v843_v0  ;;  %713 = vset.pattern.permute.xlu0 (!%p212_p10), %v843_v0 }
  0x12   : > { %s941_s7 = scalar_select %p139_p11, %s821_s17, %s141_s5  }
  0x13   : > { %p256_p13 = scmp.lt.s32.totalorder (!%p212_p10), %s944_s8, 15 }
  0x18   : > { %s255_s9 = scalar_select %p254_p12, %s829_s19, 1 }
  0x19   : > { %s257_s10 = scalar_select %p256_p13, %s944_s8, 15 }
  0x1a   : > { %s607_s11 = sshll.u32 %s255_s9, 4  ;;  %s265_s5 = scalar_lea.vmem %s1046_s1, %s255_s9 }
  0x1b   : > { %s259_s12 = sadd.s32 %s607_s11, %s257_s10  ;;  %v612_v9 = vld [vmem:[%s265_s5] ss:$0 sm:$0xff] }
  0x1c   : > { %s608_s13 = sshll.u32 %s259_s12, 3  ;;  %s611_s18 = sshll.u32 %s259_s12, 2 }
  0x1d   : > { %s261_s24 = scalar_lea.vmem %s1045_s0, %s608_s13  ;;  %s959_s11 = scalar_lea.vmem %s1047_s2, %s611_s18 }
  0x1e   : > { %v279_v1 = vld [vmem:[%s261_s24 + $0x10] sm:$0xff]  ;;  %v277_v2 = vld [vmem:[%s261_s24] sm:$0xff]  ;;  %v280_v3 = vld [vmem:[%s261_s24 + $0x18] sm:$0xff]  ;;  %s250_s13 = sand.u32 1, %s817_s16  }
  0x1f   : > { %298 = vperm.xlu1 %714, %v279_v1   ;;  %288 = vperm.xlu0 %713, %v277_v2   ;;  %v278_v4 = vld [vmem:[%s261_s24 + $0x8] sm:$0xff]  ;;  %v281_v6 = vld [vmem:[%s261_s24 + $0x20] sm:$0xff]  ;;  %v284_v7 = vld [vmem:[%s261_s24 + $0x38] sm:$0xff]  ;;  %s605_s14 = sshll.u32 %s250_s13, 6 }
  0x20   : > { %v282_v5 = vld [vmem:[%s261_s24 + $0x28] sm:$0xff]  ;;  %v283_v8 = vld [vmem:[%s261_s24 + $0x30] sm:$0xff]  ;;  %v621_v12 = vld [vmem:[%s959_s11] sm:$0xff]   ;;  %s971_s23 = scalar_lea.vmem [#allocation2], %s605_s14  ;;  %s616_s24 = sshll.u32 %s829_s19, 4 }
  0x21   : > { %v636_v13 = vld [vmem:[%s959_s11 + $0x8] sm:$0xff]   ;;  %v622_v18 = vunpack.c.l.bf16 %v621_v12  ;;  %v623_v27 = vunpack.c.h.bf16 %v621_v12  ;;  %v637_v33 = vld [vmem:[%s959_s11 + $0x10] sm:$0xff]   ;;  %v638_v47 = vld [vmem:[%s959_s11 + $0x18] sm:$0xff]   ;;  %s488_s18 = sadd.s32 %s616_s24, %s944_s8  ;;  %s491_s19 = sshll.u32 %s971_s23, 4  ;;  %s988_s19 = int_to_ptr.vmem [resolvable:$true] %s491_s19 }
  0x22   : > { %v626_v19 = vunpack.c.l.bf16 %v636_v13  ;;  %v627_v28 = vunpack.c.h.bf16 %v636_v13  ;;  %v630_v41 = vunpack.c.l.bf16 %v637_v33  ;;  %v631_v42 = vunpack.c.h.bf16 %v637_v33  ;;  %s617_s27 = sshll.u32 %s488_s18, 7  ;;  %s993_s8 = scalar_lea.sflag [#allocation3], %s250_s13 }
  0x23   : > { %303 = vperm.xlu1 %714, %v280_v3   ;;  %293 = vperm.xlu0 %713, %v278_v4   ;;  %v634_v56 = vunpack.c.l.bf16 %v638_v47  ;;  %v635_v57 = vunpack.c.h.bf16 %v638_v47  ;;  %s984_s6 = scalar_lea.hbm %s1049_s4, %s617_s27  ;;  %s747_s10 = scalar_lea.vmem %s988_s19, 1024 }
  0x24   : > { %p748_p0 = scmp.ne.s32.totalorder %s988_s19, %s747_s10  ;;  %s844_s11 = smov [#allocation2]  }
  0x25   : > { %s751_s9 = sshll.u32 %s844_s11, 4  ;;  %s752_s9 = int_to_ptr.vmem [resolvable:$false] %s751_s9 }
  0x26   : > { %p749_p1 = pnand %p748_p0, %p923_p3  ;;  %s753_s12 = scalar_lea.vmem %s752_s9, 2048 }
  0x27   : > { %313 = vperm.xlu1 %714, %v282_v5   ;;  %308 = vperm.xlu0 %713, %v281_v6   ;;  %p754_p4 = scmp.lt.s32.totalorder %s988_s19, %s752_s9  ;;  %p755_p5 = scmp.lt.s32.totalorder %s753_s12, %s747_s10 }
  0x28   : > { %p750_p2 = pneg %p749_p1 }
  0x29   : > { %p756_p6 = por %p755_p5, %p754_p4 }
  0x2b   : > { %323 = vperm.xlu1 %714, %v284_v7   ;;  %318 = vperm.xlu0 %713, %v283_v8   ;;  %p757_p7 = pnand %p756_p6, %p750_p2 }
  0x9e   : > { %v299_v10 = vpop.permute.xlu1 %298  ;;  %v289_v11 = vpop.permute.xlu0 %288 }
  0x9f   : > { %v334_v14 = vadd.f32 %v612_v9, %v299_v10  ;;  %v332_v15 = vadd.f32 %v612_v9, %v289_v11 }
  0xa1   : > { %v342_v16 = vmul.f32 0.2, %v334_v14  ;;  %v340_v17 = vmul.f32 0.2, %v332_v15 }
  0xa2   : > { %v304_v20 = vpop.permute.xlu1 %303  ;;  %v294_v21 = vpop.permute.xlu0 %293 }
  0xa3   : > { %v350_v22 = vmax.f32 %v334_v14, %v342_v16  ;;  %v348_v23 = vmax.f32 %v332_v15, %v340_v17  ;;  %v335_v24 = vadd.f32 %v612_v9, %v304_v20  ;;  %v333_v25 = vadd.f32 %v612_v9, %v294_v21 }
  0xa5   : > { %v343_v29 = vmul.f32 0.2, %v335_v24  ;;  %v341_v30 = vmul.f32 0.2, %v333_v25  ;;  %v372_v31 = vmul.f32 %v622_v18, %v348_v23  ;;  %v374_v32 = vmul.f32 %v626_v19, %v350_v22 }
  0xa6   : > { %v314_v34 = vpop.permute.xlu1 %313  ;;  %v309_v35 = vpop.permute.xlu0 %308 }
  0xa7   : > { %v351_v36 = vmax.f32 %v335_v24, %v343_v29  ;;  %v349_v37 = vmax.f32 %v333_v25, %v341_v30  ;;  %v337_v38 = vadd.f32 %v612_v9, %v314_v34  ;;  %v336_v39 = vadd.f32 %v612_v9, %v309_v35 }
  0xa8   : > { %v387_v40 = vadd.f32 %v613_v26, %v372_v31  ;;  %v389_v54 = vadd.f32 %v613_v26, %v374_v32 }
  0xa9   : > { %v345_v43 = vmul.f32 0.2, %v337_v38  ;;  %v344_v44 = vmul.f32 0.2, %v336_v39  ;;  %v373_v45 = vmul.f32 %v623_v27, %v349_v37  ;;  %v375_v46 = vmul.f32 %v627_v28, %v351_v36 }
  0xaa   : > { %395 = vmax.xlane.f32.xlu0 %v387_v40  ;;  %v324_v48 = vpop.permute.xlu1 %323  ;;  %v319_v49 = vpop.permute.xlu0 %318 }
  0xab   : > { %v353_v50 = vmax.f32 %v337_v38, %v345_v43  ;;  %v352_v51 = vmax.f32 %v336_v39, %v344_v44  ;;  %v339_v52 = vadd.f32 %v612_v9, %v324_v48  ;;  %v338_v53 = vadd.f32 %v612_v9, %v319_v49 }
  0xac   : > { %v388_v55 = vadd.f32 %v613_v26, %v373_v45  ;;  %v390_v1 = vadd.f32 %v613_v26, %v375_v46 }
  0xad   : > { %v347_v58 = vmul.f32 0.2, %v339_v52  ;;  %v346_v59 = vmul.f32 0.2, %v338_v53  ;;  %v376_v60 = vmul.f32 %v630_v41, %v352_v51  ;;  %v377_v61 = vmul.f32 %v631_v42, %v353_v50 }
  0xae   : > { %399 = vmax.xlane.f32.xlu0 %v389_v54  ;;  %397 = vmax.xlane.f32.xlu1 %v388_v55 }
  0xaf   : > { %v355_v62 = vmax.f32 %v339_v52, %v347_v58  ;;  %v354_v63 = vmax.f32 %v338_v53, %v346_v59  ;;  %v391_v0 = vadd.f32 %v613_v26, %v376_v60  ;;  %v392_v5 = vadd.f32 %v613_v26, %v377_v61 }
  0xb1   : > { %v378_v2 = vmul.f32 %v634_v56, %v354_v63  ;;  %v379_v3 = vmul.f32 %v635_v57, %v355_v62 }
  0xb2   : > { %401 = vmax.xlane.f32.xlu0 %v390_v1  ;;  %403 = vmax.xlane.f32.xlu1 %v391_v0 }
  0xb3   : > { %v393_v4 = vadd.f32 %v613_v26, %v378_v2  ;;  %v394_v6 = vadd.f32 %v613_v26, %v379_v3 }
  0xb6   : > { %405 = vmax.xlane.f32.xlu0 %v392_v5  ;;  %407 = vmax.xlane.f32.xlu1 %v393_v4 }
  0xba   : > { %409 = vmax.xlane.f32.xlu0 %v394_v6 }
 0x137   : > { %v396_v7 = vpop.xlane.xlu0 %395 }
 0x138   : > { %v411_v8 = vsub.f32 %v387_v40, %v396_v7 }
 0x13a   : > { %v419_v9 = vmul.f32 1.442695, %v411_v8 }
 0x13b   : > { %v398_v10 = vpop.xlane.xlu1 %397  ;;  %v400_v11 = vpop.xlane.xlu0 %399 }
 0x13c   : > { %715 = vpow2.f32 %v419_v9  ;;  %v412_v12 = vsub.f32 %v388_v55, %v398_v10  ;;  %v413_v13 = vsub.f32 %v389_v54, %v400_v11 }
 0x13e   : > { %v421_v14 = vmul.f32 1.442695, %v412_v12  ;;  %v423_v15 = vmul.f32 1.442695, %v413_v13 }
 0x13f   : > { %v404_v16 = vpop.xlane.xlu1 %403  ;;  %v402_v17 = vpop.xlane.xlu0 %401 }
 0x140   : > { %717 = vpow2.f32 %v421_v14  ;;  %v415_v18 = vsub.f32 %v391_v0, %v404_v16  ;;  %v414_v19 = vsub.f32 %v390_v1, %v402_v17 }
 0x141   : > { %719 = vpow2.f32 %v423_v15 }
 0x142   : > { %v427_v20 = vmul.f32 1.442695, %v415_v18  ;;  %v425_v21 = vmul.f32 1.442695, %v414_v19 }
 0x143   : > { %v408_v22 = vpop.xlane.xlu1 %407  ;;  %v406_v23 = vpop.xlane.xlu0 %405 }
 0x144   : > { %721 = vpow2.f32 %v427_v20  ;;  %v417_v24 = vsub.f32 %v393_v4, %v408_v22  ;;  %v416_v25 = vsub.f32 %v392_v5, %v406_v23 }
 0x145   : > { %723 = vpow2.f32 %v425_v21 }
 0x146   : > { %v716_v26 = vpop.eup %715  ;;  %v431_v27 = vmul.f32 1.442695, %v417_v24  ;;  %v429_v28 = vmul.f32 1.442695, %v416_v25 }
 0x147   : > { %435 = vadd.xlane.f32.xlu1 %v716_v26  ;;  %v410_v29 = vpop.xlane.xlu0 %409 }
 0x148   : > { %725 = vpow2.f32 %v431_v27  ;;  %v418_v30 = vsub.f32 %v394_v6, %v410_v29 }
 0x149   : > { %727 = vpow2.f32 %v429_v28 }
 0x14a   : > { %v718_v31 = vpop.eup %717  ;;  %v433_v32 = vmul.f32 1.442695, %v418_v30 }
 0x14b   : > { %v720_v33 = vpop.eup %719  ;;  %437 = vadd.xlane.f32.xlu0 %v718_v31 }
 0x14c   : > { %729 = vpow2.f32 %v433_v32  ;;  %439 = vadd.xlane.f32.xlu1 %v720_v33 }
 0x14e   : > { %v722_v34 = vpop.eup %721 }
 0x14f   : > { %v724_v35 = vpop.eup %723 }
 0x150   : > { %443 = vadd.xlane.f32.xlu1 %v722_v34  ;;  %441 = vadd.xlane.f32.xlu0 %v724_v35 }
 0x152   : > { %v726_v36 = vpop.eup %725 }
 0x153   : > { %v728_v37 = vpop.eup %727 }
 0x154   : > { %447 = vadd.xlane.f32.xlu1 %v726_v36  ;;  %445 = vadd.xlane.f32.xlu0 %v728_v37 }
 0x156   : > { %v730_v38 = vpop.eup %729 }
 0x158   : > { %449 = vadd.xlane.f32.xlu0 %v730_v38 }
 0x1d4   : > { %v436_v39 = vpop.xlane.xlu1 %435 }
 0x1d5   : > { %731 = vrcp.f32 %v436_v39 }
 0x1d8   : > { %v438_v40 = vpop.xlane.xlu0 %437 }
 0x1d9   : > { %v440_v41 = vpop.xlane.xlu1 %439  ;;  %733 = vrcp.f32 %v438_v40 }
 0x1da   : > { %735 = vrcp.f32 %v440_v41 }
 0x1dd   : > { %v444_v42 = vpop.xlane.xlu1 %443  ;;  %v442_v43 = vpop.xlane.xlu0 %441 }
 0x1de   : > { %737 = vrcp.f32 %v444_v42 }
 0x1df   : > { %v732_v44 = vpop.eup %731  ;;  %739 = vrcp.f32 %v442_v43 }
 0x1e0   : > { %v459_v45 = vmul.f32 %v732_v44, %v716_v26 }
 0x1e1   : > { %v448_v46 = vpop.xlane.xlu1 %447  ;;  %v446_v47 = vpop.xlane.xlu0 %445 }
 0x1e2   : > { %467 = vst [vmem:[%s971_s23] sm:$0xff] %v459_v45  ;;  %741 = vrcp.f32 %v448_v46 }
 0x1e3   : > { %v734_v48 = vpop.eup %733  ;;  %743 = vrcp.f32 %v446_v47 }
 0x1e4   : > { %v736_v49 = vpop.eup %735  ;;  %v460_v50 = vmul.f32 %v734_v48, %v718_v31 }
 0x1e5   : > { %v461_v51 = vmul.f32 %v736_v49, %v720_v33  ;;  %v450_v52 = vpop.xlane.xlu0 %449 }
 0x1e6   : > { %468 = vst [vmem:[%s971_s23 + $0x8] sm:$0xff] %v460_v50  ;;  %745 = vrcp.f32 %v450_v52 }
 0x1e7   : > { %469 = vst [vmem:[%s971_s23 + $0x10] sm:$0xff] %v461_v51 }
 0x1e8   : > { %v738_v53 = vpop.eup %737 }
 0x1e9   : > { %v740_v54 = vpop.eup %739  ;;  %v463_v55 = vmul.f32 %v738_v53, %v722_v34 }
 0x1ea   : > { %v462_v56 = vmul.f32 %v740_v54, %v724_v35 }
 0x1eb   : > { %471 = vst [vmem:[%s971_s23 + $0x20] sm:$0xff] %v463_v55 }
 0x1ec   : > { %v742_v57 = vpop.eup %741  ;;  %470 = vst [vmem:[%s971_s23 + $0x18] sm:$0xff] %v462_v56 }
 0x1ed   : > { %v744_v58 = vpop.eup %743  ;;  %v465_v59 = vmul.f32 %v742_v57, %v726_v36 }
 0x1ee   : > { %v464_v60 = vmul.f32 %v744_v58, %v728_v37 }
 0x1ef   : > { %473 = vst [vmem:[%s971_s23 + $0x30] sm:$0xff] %v465_v59 }
 0x1f0   : > { %v746_v61 = vpop.eup %745  ;;  %472 = vst [vmem:[%s971_s23 + $0x28] sm:$0xff] %v464_v60 }
 0x1f1   : > { %v466_v62 = vmul.f32 %v746_v61, %v730_v38 }
 0x1f3   : > { %474 = vst [vmem:[%s971_s23 + $0x38] sm:$0xff] %v466_v62 }
 0x1f4   : > { %760 = shalt.err (!%p757_p7)
}
 0x1f5   : > { %s761_s13 = scalar_lea.hbm %s984_s6, 1024  ;;  %s765_s24 = scalar_lea.hbm %s1049_s4, 4096 }
 0x1f6   : > { %p762_p9 = scmp.ne.s32.totalorder %s984_s6, %s761_s13  ;;  %p766_p12 = scmp.lt.u32.totalorder %s984_s6, %s1049_s4 }
 0x1f7   : > { %p767_p13 = scmp.lt.u32.totalorder %s765_s24, %s761_s13  ;;  %p769_p1 = scmp.lt.u32.totalorder %s761_s13, %s984_s6 }
 0x1f8   : > { %p763_p10 = pnand %p762_p9, %p923_p3 }
 0x1f9   : > { %p768_p0 = por %p767_p13, %p766_p12 }
 0x1fa   : > { %p764_p11 = pneg %p763_p10 }
 0x1fb   : > { %p770_p2 = por %p769_p1, %p768_p0 }
 0x1fd   : > { %p771_p4 = pnand %p770_p2, %p764_p11 }
 0x1ff   : > { %774 = shalt.err (!%p771_p4)
}
 0x200   : > { %s845_s30 = smov 128   ;;  %s846_s5 = smov 8  }
 0x201   : > { %639 = dma.vmem_to_hbm [thread:$0]  (%p923_p3), %s988_s19, 1024, %s984_s6, %s993_s8, %s845_s30, %s845_s30, %s846_s5  }
 0x202 PF: > { %p645_p5 = scmp.ge.s32.totalorder %s841_s22, 2  ;;  %s506_s10 = sand.u32 1, %s813_s15  }
 0x203   : > { %s507_s11 = scalar_lea.sflag [#allocation3], %s506_s10 }
 0x204   : > { %p642_p6 = pnand %p645_p5, %p932_p8 }
 0x206   : > { %808 = dma.done.wait (!%p642_p6), %s507_s11, 1024  }
 0x207   : > { %810 = vsyncadd (!%p642_p6), %s507_s11, 4294966272  ;;  %s17_s22 = sadd.s32 1, %s841_s22   ;;  %s1052_s15 = smov %s817_s16 }
 0x208   : > { %p14_p7 = scmp.ge.s32.totalorder %s17_s22, 6   ;;  %s1053_s16 = smov %s821_s17 }
 0x209   : > { %s1054_s17 = smov %s941_s7  ;;  %s1055_s18 = smov %s833_s20 }
 0x20a   : > { %s1056_s19 = smov %s837_s21  ;;  %s1057_s20 = smov %s1060_s25 }
 0x20b   : > { %s1058_s21 = smov %s1064_s26  ;;  %16 = sbr.rel (!%p14_p7) target bundleno = 5 (0x5), region = 77 }
 0x212   :  { %512 = vsyncpa [#allocation3], 1 }
 0x213   :  { %514 = vsyncpa [#allocation3 + $0x1], 1 }

</bundles_post_ra>
